<compile_context>
chip_gen: v7x
topology: tpu7x:2x2x1
jax: 0.10.0
libtpu: 0.0.40
codegen_flags: <defaults>
</compile_context>

<pallas_src>
import jax
import jax.numpy as jnp
from jax.experimental import pallas as pl
from jax.experimental.pallas import tpu as pltpu


def _compl_mul_kernel(x_ref, w_ref, o_ref):
    """One (spectral-tile, cin-block) grid step of out[b,o,s] += x[b,c,s] * w[c,o,s] (complex).

    Block shapes (leading axis 0/1 = real/imag):
      x_ref : (2, B,       CIN_BLK, TS)
      w_ref : (2, CIN_BLK, Cout,    TS)
      o_ref : (2, B,       Cout,    TS)   -- resident across the Cin ("arbitrary") grid axis
    """
    # Zero the resident accumulator block at the start of the Cin reduction.
    @pl.when(pl.program_id(1) == 0)
    def _():
        o_ref[...] = jnp.zeros_like(o_ref)

    xr = x_ref[0]          # (B, CIN_BLK, TS)
    xi = x_ref[1]
    wr = w_ref[0]          # (CIN_BLK, Cout, TS)
    wi = w_ref[1]
    cin_blk = xr.shape[1]

    def partial(c):
        xrc = xr[:, c, None, :]          # (B, 1, TS)
        xic = xi[:, c, None, :]
        wrc = wr[None, c, :, :]          # (1, Cout, TS)
        wic = wi[None, c, :, :]
        # Direct 4-multiply complex MAC (no Karatsuba on a no-FMA VPU).
        return xrc * wrc - xic * wic, xrc * wic + xic * wrc

    acc_r, acc_i = partial(0)
    for c in range(1, cin_blk):          # static unroll over the Cin block
        pr, pi = partial(c)
        acc_r = acc_r + pr
        acc_i = acc_i + pi

    # Single accumulator read-modify-write per grid step.
    o_ref[0] += acc_r
    o_ref[1] += acc_i


def _choose_tiles(B, Cin, Cout):
    """Pick (CIN_BLK, TS) under a conservative VMEM budget (safe on v7x's 64 MiB)."""
    cin_blk = Cin if Cin <= 8 else 8
    budget = 40 * 1024 * 1024
    ts = 128
    for cand in (512, 256, 128):
        # re/im (x2) * double-buffer (x2) * f32 (x4B) for x, w and the resident output.
        blk_bytes = 16 * cand * (B * cin_blk + cin_blk * Cout + B * Cout)
        if blk_bytes <= budget:
            ts = cand
            break
    return cin_blk, ts


def _compl_mul2d_corners(x_c, w_c):
    """Complex einsum 'bims,ioms->boms' with (m,s) flattened to a lane-dense axis.

    x_c: complex64 (B, Cin, M, M2)   -- M = 2*modes1 (both corners fused)
    w_c: complex64 (Cin, Cout, M, M2)
    returns complex64 (B, Cout, M, M2)
    """
    B, Cin, M, M2 = x_c.shape
    Cout = w_c.shape[1]
    S = M * M2

    cin_blk, TS = _choose_tiles(B, Cin, Cout)
    S_pad = -(-S // TS) * TS                          # lane-dense trailing axis
    Cin_pad = Cin if Cin <= 8 else -(-Cin // cin_blk) * cin_blk

    xr = jnp.real(x_c).astype(jnp.float32).reshape(B, Cin, S)
    xi = jnp.imag(x_c).astype(jnp.float32).reshape(B, Cin, S)
    wr = jnp.real(w_c).astype(jnp.float32).reshape(Cin, Cout, S)
    wi = jnp.imag(w_c).astype(jnp.float32).reshape(Cin, Cout, S)

    # Pack real/imag on a leading size-2 axis (halves the DMA streams) and fuse the
    # spectral / channel zero-padding with the split (one zero-fill + scatter per operand).
    x_pack = jnp.zeros((2, B, Cin_pad, S_pad), jnp.float32)
    x_pack = x_pack.at[0, :, :Cin, :S].set(xr).at[1, :, :Cin, :S].set(xi)
    w_pack = jnp.zeros((2, Cin_pad, Cout, S_pad), jnp.float32)
    w_pack = w_pack.at[0, :Cin, :, :S].set(wr).at[1, :Cin, :, :S].set(wi)

    grid = (S_pad // TS, Cin_pad // cin_blk)          # (parallel spectral tiles, Cin blocks)

    x_spec = pl.BlockSpec((2, B, cin_blk, TS), lambda s, i: (0, 0, i, s))
    w_spec = pl.BlockSpec((2, cin_blk, Cout, TS), lambda s, i: (0, i, 0, s))
    o_spec = pl.BlockSpec((2, B, Cout, TS), lambda s, i: (0, 0, 0, s))  # invariant in i -> resident

    out = pl.pallas_call(
        _compl_mul_kernel,
        grid=grid,
        in_specs=[x_spec, w_spec],
        out_specs=o_spec,
        out_shape=jax.ShapeDtypeStruct((2, B, Cout, S_pad), jnp.float32),
        compiler_params=pltpu.CompilerParams(
            dimension_semantics=("parallel", "arbitrary"),
            vmem_limit_bytes=48 * 1024 * 1024),
    )(x_pack, w_pack)

    out_c = (out[0, :, :, :S] + 1j * out[1, :, :, :S]).astype(jnp.complex64)
    return out_c.reshape(B, Cout, M, M2)


def spectral_conv2d_fast(x, weights1, weights2, modes1, modes2):
    """Forward pass of SpectralConv2d_fast. x: (B, Cin, H, W) float32."""
    B, Cin, H, W = x.shape
    Cout = weights1.shape[1]
    Wf = W // 2 + 1

    # Corner fusion assumes disjoint low/high frequency slabs (matches typical FNO usage).
    assert modes1 <= H // 2, "modes1 must be <= H//2 for disjoint spectral corners"
    assert modes2 <= Wf, "modes2 must be <= W//2 + 1"

    # TODO(synk): rfft2 / irfft2 stay in plain JAX (no Pallas TPU FFT primitive).
    x_ft = jnp.fft.rfft2(x).astype(jnp.complex64)          # (B, Cin, H, Wf)

    # Fuse the two low-frequency corners into a single Pallas call.
    x_corners = jnp.concatenate(
        [x_ft[:, :, :modes1, :modes2], x_ft[:, :, H - modes1:, :modes2]], axis=2)
    w_corners = jnp.concatenate([weights1, weights2], axis=2).astype(jnp.complex64)

    o = _compl_mul2d_corners(x_corners, w_corners)         # (B, Cout, 2*modes1, modes2)

    out_ft = jnp.zeros((B, Cout, H, Wf), jnp.complex64)
    out_ft = out_ft.at[:, :, :modes1, :modes2].set(o[:, :, :modes1])
    out_ft = out_ft.at[:, :, H - modes1:, :modes2].set(o[:, :, modes1:])

    return jnp.fft.irfft2(out_ft, s=(H, W)).astype(jnp.float32)


def _reference(x, weights1, weights2, modes1, modes2):
    """Pure-jnp reference (same semantics as the PyTorch module)."""
    B, Cin, H, W = x.shape
    Cout = weights1.shape[1]
    Wf = W // 2 + 1
    x_ft = jnp.fft.rfft2(x).astype(jnp.complex64)
    o1 = jnp.einsum('bixy,ioxy->boxy', x_ft[:, :, :modes1, :modes2], weights1)
    o2 = jnp.einsum('bixy,ioxy->boxy', x_ft[:, :, H - modes1:, :modes2], weights2)
    out_ft = jnp.zeros((B, Cout, H, Wf), jnp.complex64)
    out_ft = out_ft.at[:, :, :modes1, :modes2].set(o1)
    out_ft = out_ft.at[:, :, H - modes1:, :modes2].set(o2)
    return jnp.fft.irfft2(out_ft, s=(H, W)).astype(jnp.float32)


if __name__ == "__main__":
    # Small, module-consistent shapes.
    B, Cin, Cout, H, W = 2, 4, 4, 16, 16
    modes1, modes2 = 4, 4

    key = jax.random.PRNGKey(0)
    kx, kw1r, kw1i, kw2r, kw2i = jax.random.split(key, 5)

    x = jax.random.normal(kx, (B, Cin, H, W), dtype=jnp.float32)

    # Deterministic init mirroring: scale * torch.rand(..., dtype=cfloat)
    # (uniform [0,1) real and imaginary parts, scaled by 1/(Cin*Cout)).
    scale = 1.0 / (Cin * Cout)
    w_shape = (Cin, Cout, modes1, modes2)
    weights1 = (scale * jax.random.uniform(kw1r, w_shape)
                + 1j * scale * jax.random.uniform(kw1i, w_shape)).astype(jnp.complex64)
    weights2 = (scale * jax.random.uniform(kw2r, w_shape)
                + 1j * scale * jax.random.uniform(kw2i, w_shape)).astype(jnp.complex64)

    fwd = jax.jit(spectral_conv2d_fast, static_argnums=(3, 4))
    out = jax.block_until_ready(fwd(x, weights1, weights2, modes1, modes2))

    ref = jax.block_until_ready(_reference(x, weights1, weights2, modes1, modes2))
    assert out.shape == (B, Cout, H, W)
    assert jnp.allclose(out, ref, atol=1e-4, rtol=1e-4), "Pallas output mismatch vs reference"

    print("KERNEL_OK")
</pallas_src>

<mosaic_0001>
module attributes {stable_mosaic.version = 11 : i64} {
  func.func @_compl_mul_kernel(%arg0: i32, %arg1: i32, %arg2: memref<2x2x4x512xf32, #tpu.memory_space<vmem>>, %arg3: memref<2x4x4x512xf32, #tpu.memory_space<vmem>>, %arg4: memref<2x2x4x512xf32, #tpu.memory_space<vmem>>) attributes {dimension_semantics = [#tpu.dimension_semantics<parallel>, #tpu.dimension_semantics<arbitrary>], iteration_bounds = array<i64: 1, 1>, scalar_prefetch = 0 : i64, scratch_operands = 0 : i64, tpu.core_type = #tpu.core_type<tc>, window_params = [{transform_indices = @transform_0, window_bounds = array<i64: 2, 2, 4, 512>}, {transform_indices = @transform_1, window_bounds = array<i64: 2, 4, 4, 512>}, {transform_indices = @transform_2, window_bounds = array<i64: 2, 2, 4, 512>}]} {
    %c0_i32 = arith.constant 0 : i32
    %0 = arith.cmpi eq, %arg1, %c0_i32 : i32
    %1 = arith.extui %0 : i1 to i32
    %c0_i32_0 = arith.constant 0 : i32
    %2 = arith.cmpi ne, %1, %c0_i32_0 : i32
    scf.if %2 {
      %cst = arith.constant 0.000000e+00 : f32
      %133 = vector.broadcast %cst : f32 to vector<2x2x4x512xf32>
      %c0_31 = arith.constant 0 : index
      %c0_32 = arith.constant 0 : index
      %c0_33 = arith.constant 0 : index
      %c0_34 = arith.constant 0 : index
      %134 = vector.load %arg4[%c0_31, %c0_32, %c0_33, %c0_34] : memref<2x2x4x512xf32, #tpu.memory_space<vmem>>, vector<2x2x4x512xf32>
      tpu.vector_store %arg4[%c0_31, %c0_32, %c0_33, %c0_34], %133 {strides = array<i32>} : memref<2x2x4x512xf32, #tpu.memory_space<vmem>>, vector<2x2x4x512xf32>,
    } else {
    }
    %c0 = arith.constant 0 : index
    %c0_1 = arith.constant 0 : index
    %c0_2 = arith.constant 0 : index
    %c0_3 = arith.constant 0 : index
    %3 = vector.load %arg2[%c0, %c0_1, %c0_2, %c0_3] : memref<2x2x4x512xf32, #tpu.memory_space<vmem>>, vector<1x2x4x512xf32>
    %4 = vector.shape_cast %3 : vector<1x2x4x512xf32> to vector<2x4x512xf32>
    %c1 = arith.constant 1 : index
    %c0_4 = arith.constant 0 : index
    %c0_5 = arith.constant 0 : index
    %c0_6 = arith.constant 0 : index
    %5 = vector.load %arg2[%c1, %c0_4, %c0_5, %c0_6] : memref<2x2x4x512xf32, #tpu.memory_space<vmem>>, vector<1x2x4x512xf32>
    %6 = vector.shape_cast %5 : vector<1x2x4x512xf32> to vector<2x4x512xf32>
    %c0_7 = arith.constant 0 : index
    %c0_8 = arith.constant 0 : index
    %c0_9 = arith.constant 0 : index
    %c0_10 = arith.constant 0 : index
    %7 = vector.load %arg3[%c0_7, %c0_8, %c0_9, %c0_10] : memref<2x4x4x512xf32, #tpu.memory_space<vmem>>, vector<1x4x4x512xf32>
    %8 = vector.shape_cast %7 : vector<1x4x4x512xf32> to vector<4x4x512xf32>
    %c1_11 = arith.constant 1 : index
    %c0_12 = arith.constant 0 : index
    %c0_13 = arith.constant 0 : index
    %c0_14 = arith.constant 0 : index
    %9 = vector.load %arg3[%c1_11, %c0_12, %c0_13, %c0_14] : memref<2x4x4x512xf32, #tpu.memory_space<vmem>>, vector<1x4x4x512xf32>
    %10 = vector.shape_cast %9 : vector<1x4x4x512xf32> to vector<4x4x512xf32>
    %11 = vector.extract_strided_slice %4 {offsets = [0, 0, 0], sizes = [2, 1, 512], strides = [1, 1, 1]} : vector<2x4x512xf32> to vector<2x1x512xf32>
    %12 = vector.shape_cast %11 : vector<2x1x512xf32> to vector<2x512xf32>
    %13 = vector.shape_cast %12 : vector<2x512xf32> to vector<2x1x512xf32>
    %14 = vector.extract_strided_slice %6 {offsets = [0, 0, 0], sizes = [2, 1, 512], strides = [1, 1, 1]} : vector<2x4x512xf32> to vector<2x1x512xf32>
    %15 = vector.shape_cast %14 : vector<2x1x512xf32> to vector<2x512xf32>
    %16 = vector.shape_cast %15 : vector<2x512xf32> to vector<2x1x512xf32>
    %17 = vector.extract_strided_slice %8 {offsets = [0, 0, 0], sizes = [1, 4, 512], strides = [1, 1, 1]} : vector<4x4x512xf32> to vector<1x4x512xf32>
    %18 = vector.shape_cast %17 : vector<1x4x512xf32> to vector<4x512xf32>
    %19 = vector.shape_cast %18 : vector<4x512xf32> to vector<1x4x512xf32>
    %20 = vector.extract_strided_slice %10 {offsets = [0, 0, 0], sizes = [1, 4, 512], strides = [1, 1, 1]} : vector<4x4x512xf32> to vector<1x4x512xf32>
    %21 = vector.shape_cast %20 : vector<1x4x512xf32> to vector<4x512xf32>
    %22 = vector.shape_cast %21 : vector<4x512xf32> to vector<1x4x512xf32>
    %23 = vector.broadcast %13 : vector<2x1x512xf32> to vector<2x4x512xf32>
    %24 = vector.broadcast %19 : vector<1x4x512xf32> to vector<2x4x512xf32>
    %25 = arith.mulf %23, %24 : vector<2x4x512xf32>
    %26 = vector.broadcast %16 : vector<2x1x512xf32> to vector<2x4x512xf32>
    %27 = vector.broadcast %22 : vector<1x4x512xf32> to vector<2x4x512xf32>
    %28 = arith.mulf %26, %27 : vector<2x4x512xf32>
    %29 = arith.subf %25, %28 : vector<2x4x512xf32>
    %30 = vector.broadcast %13 : vector<2x1x512xf32> to vector<2x4x512xf32>
    %31 = vector.broadcast %22 : vector<1x4x512xf32> to vector<2x4x512xf32>
    %32 = arith.mulf %30, %31 : vector<2x4x512xf32>
    %33 = vector.broadcast %16 : vector<2x1x512xf32> to vector<2x4x512xf32>
    %34 = vector.broadcast %19 : vector<1x4x512xf32> to vector<2x4x512xf32>
    %35 = arith.mulf %33, %34 : vector<2x4x512xf32>
    %36 = arith.addf %32, %35 : vector<2x4x512xf32>
    %37 = vector.extract_strided_slice %4 {offsets = [0, 1, 0], sizes = [2, 1, 512], strides = [1, 1, 1]} : vector<2x4x512xf32> to vector<2x1x512xf32>
    %38 = vector.shape_cast %37 : vector<2x1x512xf32> to vector<2x512xf32>
    %39 = vector.shape_cast %38 : vector<2x512xf32> to vector<2x1x512xf32>
    %40 = vector.extract_strided_slice %6 {offsets = [0, 1, 0], sizes = [2, 1, 512], strides = [1, 1, 1]} : vector<2x4x512xf32> to vector<2x1x512xf32>
    %41 = vector.shape_cast %40 : vector<2x1x512xf32> to vector<2x512xf32>
    %42 = vector.shape_cast %41 : vector<2x512xf32> to vector<2x1x512xf32>
    %43 = vector.extract_strided_slice %8 {offsets = [1, 0, 0], sizes = [1, 4, 512], strides = [1, 1, 1]} : vector<4x4x512xf32> to vector<1x4x512xf32>
    %44 = vector.shape_cast %43 : vector<1x4x512xf32> to vector<4x512xf32>
    %45 = vector.shape_cast %44 : vector<4x512xf32> to vector<1x4x512xf32>
    %46 = vector.extract_strided_slice %10 {offsets = [1, 0, 0], sizes = [1, 4, 512], strides = [1, 1, 1]} : vector<4x4x512xf32> to vector<1x4x512xf32>
    %47 = vector.shape_cast %46 : vector<1x4x512xf32> to vector<4x512xf32>
    %48 = vector.shape_cast %47 : vector<4x512xf32> to vector<1x4x512xf32>
    %49 = vector.broadcast %39 : vector<2x1x512xf32> to vector<2x4x512xf32>
    %50 = vector.broadcast %45 : vector<1x4x512xf32> to vector<2x4x512xf32>
    %51 = arith.mulf %49, %50 : vector<2x4x512xf32>
    %52 = vector.broadcast %42 : vector<2x1x512xf32> to vector<2x4x512xf32>
    %53 = vector.broadcast %48 : vector<1x4x512xf32> to vector<2x4x512xf32>
    %54 = arith.mulf %52, %53 : vector<2x4x512xf32>
    %55 = arith.subf %51, %54 : vector<2x4x512xf32>
    %56 = vector.broadcast %39 : vector<2x1x512xf32> to vector<2x4x512xf32>
    %57 = vector.broadcast %48 : vector<1x4x512xf32> to vector<2x4x512xf32>
    %58 = arith.mulf %56, %57 : vector<2x4x512xf32>
    %59 = vector.broadcast %42 : vector<2x1x512xf32> to vector<2x4x512xf32>
    %60 = vector.broadcast %45 : vector<1x4x512xf32> to vector<2x4x512xf32>
    %61 = arith.mulf %59, %60 : vector<2x4x512xf32>
    %62 = arith.addf %58, %61 : vector<2x4x512xf32>
    %63 = arith.addf %29, %55 : vector<2x4x512xf32>
    %64 = arith.addf %36, %62 : vector<2x4x512xf32>
    %65 = vector.extract_strided_slice %4 {offsets = [0, 2, 0], sizes = [2, 1, 512], strides = [1, 1, 1]} : vector<2x4x512xf32> to vector<2x1x512xf32>
    %66 = vector.shape_cast %65 : vector<2x1x512xf32> to vector<2x512xf32>
    %67 = vector.shape_cast %66 : vector<2x512xf32> to vector<2x1x512xf32>
    %68 = vector.extract_strided_slice %6 {offsets = [0, 2, 0], sizes = [2, 1, 512], strides = [1, 1, 1]} : vector<2x4x512xf32> to vector<2x1x512xf32>
    %69 = vector.shape_cast %68 : vector<2x1x512xf32> to vector<2x512xf32>
    %70 = vector.shape_cast %69 : vector<2x512xf32> to vector<2x1x512xf32>
    %71 = vector.extract_strided_slice %8 {offsets = [2, 0, 0], sizes = [1, 4, 512], strides = [1, 1, 1]} : vector<4x4x512xf32> to vector<1x4x512xf32>
    %72 = vector.shape_cast %71 : vector<1x4x512xf32> to vector<4x512xf32>
    %73 = vector.shape_cast %72 : vector<4x512xf32> to vector<1x4x512xf32>
    %74 = vector.extract_strided_slice %10 {offsets = [2, 0, 0], sizes = [1, 4, 512], strides = [1, 1, 1]} : vector<4x4x512xf32> to vector<1x4x512xf32>
    %75 = vector.shape_cast %74 : vector<1x4x512xf32> to vector<4x512xf32>
    %76 = vector.shape_cast %75 : vector<4x512xf32> to vector<1x4x512xf32>
    %77 = vector.broadcast %67 : vector<2x1x512xf32> to vector<2x4x512xf32>
    %78 = vector.broadcast %73 : vector<1x4x512xf32> to vector<2x4x512xf32>
    %79 = arith.mulf %77, %78 : vector<2x4x512xf32>
    %80 = vector.broadcast %70 : vector<2x1x512xf32> to vector<2x4x512xf32>
    %81 = vector.broadcast %76 : vector<1x4x512xf32> to vector<2x4x512xf32>
    %82 = arith.mulf %80, %81 : vector<2x4x512xf32>
    %83 = arith.subf %79, %82 : vector<2x4x512xf32>
    %84 = vector.broadcast %67 : vector<2x1x512xf32> to vector<2x4x512xf32>
    %85 = vector.broadcast %76 : vector<1x4x512xf32> to vector<2x4x512xf32>
    %86 = arith.mulf %84, %85 : vector<2x4x512xf32>
    %87 = vector.broadcast %70 : vector<2x1x512xf32> to vector<2x4x512xf32>
    %88 = vector.broadcast %73 : vector<1x4x512xf32> to vector<2x4x512xf32>
    %89 = arith.mulf %87, %88 : vector<2x4x512xf32>
    %90 = arith.addf %86, %89 : vector<2x4x512xf32>
    %91 = arith.addf %63, %83 : vector<2x4x512xf32>
    %92 = arith.addf %64, %90 : vector<2x4x512xf32>
    %93 = vector.extract_strided_slice %4 {offsets = [0, 3, 0], sizes = [2, 1, 512], strides = [1, 1, 1]} : vector<2x4x512xf32> to vector<2x1x512xf32>
    %94 = vector.shape_cast %93 : vector<2x1x512xf32> to vector<2x512xf32>
    %95 = vector.shape_cast %94 : vector<2x512xf32> to vector<2x1x512xf32>
    %96 = vector.extract_strided_slice %6 {offsets = [0, 3, 0], sizes = [2, 1, 512], strides = [1, 1, 1]} : vector<2x4x512xf32> to vector<2x1x512xf32>
    %97 = vector.shape_cast %96 : vector<2x1x512xf32> to vector<2x512xf32>
    %98 = vector.shape_cast %97 : vector<2x512xf32> to vector<2x1x512xf32>
    %99 = vector.extract_strided_slice %8 {offsets = [3, 0, 0], sizes = [1, 4, 512], strides = [1, 1, 1]} : vector<4x4x512xf32> to vector<1x4x512xf32>
    %100 = vector.shape_cast %99 : vector<1x4x512xf32> to vector<4x512xf32>
    %101 = vector.shape_cast %100 : vector<4x512xf32> to vector<1x4x512xf32>
    %102 = vector.extract_strided_slice %10 {offsets = [3, 0, 0], sizes = [1, 4, 512], strides = [1, 1, 1]} : vector<4x4x512xf32> to vector<1x4x512xf32>
    %103 = vector.shape_cast %102 : vector<1x4x512xf32> to vector<4x512xf32>
    %104 = vector.shape_cast %103 : vector<4x512xf32> to vector<1x4x512xf32>
    %105 = vector.broadcast %95 : vector<2x1x512xf32> to vector<2x4x512xf32>
    %106 = vector.broadcast %101 : vector<1x4x512xf32> to vector<2x4x512xf32>
    %107 = arith.mulf %105, %106 : vector<2x4x512xf32>
    %108 = vector.broadcast %98 : vector<2x1x512xf32> to vector<2x4x512xf32>
    %109 = vector.broadcast %104 : vector<1x4x512xf32> to vector<2x4x512xf32>
    %110 = arith.mulf %108, %109 : vector<2x4x512xf32>
    %111 = arith.subf %107, %110 : vector<2x4x512xf32>
    %112 = vector.broadcast %95 : vector<2x1x512xf32> to vector<2x4x512xf32>
    %113 = vector.broadcast %104 : vector<1x4x512xf32> to vector<2x4x512xf32>
    %114 = arith.mulf %112, %113 : vector<2x4x512xf32>
    %115 = vector.broadcast %98 : vector<2x1x512xf32> to vector<2x4x512xf32>
    %116 = vector.broadcast %101 : vector<1x4x512xf32> to vector<2x4x512xf32>
    %117 = arith.mulf %115, %116 : vector<2x4x512xf32>
    %118 = arith.addf %114, %117 : vector<2x4x512xf32>
    %119 = arith.addf %91, %111 : vector<2x4x512xf32>
    %120 = arith.addf %92, %118 : vector<2x4x512xf32>
    %c0_15 = arith.constant 0 : index
    %c0_16 = arith.constant 0 : index
    %c0_17 = arith.constant 0 : index
    %c0_18 = arith.constant 0 : index
    %121 = vector.load %arg4[%c0_15, %c0_16, %c0_17, %c0_18] : memref<2x2x4x512xf32, #tpu.memory_space<vmem>>, vector<1x2x4x512xf32>
    %122 = vector.shape_cast %121 : vector<1x2x4x512xf32> to vector<2x4x512xf32>
    %123 = arith.addf %122, %119 : vector<2x4x512xf32>
    %c0_19 = arith.constant 0 : index
    %c0_20 = arith.constant 0 : index
    %c0_21 = arith.constant 0 : index
    %c0_22 = arith.constant 0 : index
    %124 = vector.load %arg4[%c0_19, %c0_20, %c0_21, %c0_22] : memref<2x2x4x512xf32, #tpu.memory_space<vmem>>, vector<1x2x4x512xf32>
    %125 = vector.shape_cast %124 : vector<1x2x4x512xf32> to vector<2x4x512xf32>
    %126 = vector.shape_cast %123 : vector<2x4x512xf32> to vector<1x2x4x512xf32>
    tpu.vector_store %arg4[%c0_19, %c0_20, %c0_21, %c0_22], %126 {strides = array<i32>} : memref<2x2x4x512xf32, #tpu.memory_space<vmem>>, vector<1x2x4x512xf32>,
    %c1_23 = arith.constant 1 : index
    %c0_24 = arith.constant 0 : index
    %c0_25 = arith.constant 0 : index
    %c0_26 = arith.constant 0 : index
    %127 = vector.load %arg4[%c1_23, %c0_24, %c0_25, %c0_26] : memref<2x2x4x512xf32, #tpu.memory_space<vmem>>, vector<1x2x4x512xf32>
    %128 = vector.shape_cast %127 : vector<1x2x4x512xf32> to vector<2x4x512xf32>
    %129 = arith.addf %128, %120 : vector<2x4x512xf32>
    %c1_27 = arith.constant 1 : index
    %c0_28 = arith.constant 0 : index
    %c0_29 = arith.constant 0 : index
    %c0_30 = arith.constant 0 : index
    %130 = vector.load %arg4[%c1_27, %c0_28, %c0_29, %c0_30] : memref<2x2x4x512xf32, #tpu.memory_space<vmem>>, vector<1x2x4x512xf32>
    %131 = vector.shape_cast %130 : vector<1x2x4x512xf32> to vector<2x4x512xf32>
    %132 = vector.shape_cast %129 : vector<2x4x512xf32> to vector<1x2x4x512xf32>
    tpu.vector_store %arg4[%c1_27, %c0_28, %c0_29, %c0_30], %132 {strides = array<i32>} : memref<2x2x4x512xf32, #tpu.memory_space<vmem>>, vector<1x2x4x512xf32>,
    return
  }
  func.func @transform_0(%arg0: i32, %arg1: i32) -> (i32, i32, i32, i32) {
    %c0_i32 = arith.constant 0 : i32
    %c0_i32_0 = arith.constant 0 : i32
    %c0_i32_1 = arith.constant 0 : i32
    return %c0_i32, %c0_i32_0, %arg1, %arg0 : i32, i32, i32, i32
  }
  func.func @transform_1(%arg0: i32, %arg1: i32) -> (i32, i32, i32, i32) {
    %c0_i32 = arith.constant 0 : i32
    %c0_i32_0 = arith.constant 0 : i32
    %c0_i32_1 = arith.constant 0 : i32
    return %c0_i32, %arg1, %c0_i32_0, %arg0 : i32, i32, i32, i32
  }
  func.func @transform_2(%arg0: i32, %arg1: i32) -> (i32, i32, i32, i32) {
    %c0_i32 = arith.constant 0 : i32
    %c0_i32_0 = arith.constant 0 : i32
    %c0_i32_1 = arith.constant 0 : i32
    %c0_i32_2 = arith.constant 0 : i32
    return %c0_i32, %c0_i32_0, %c0_i32_1, %arg0 : i32, i32, i32, i32
  }
}

</mosaic_0001>

<bundles_post_ra>
// kernel: custom-call
= control target key start
LH: loop header
LB: loop body
LE: loop exit
PB: predicated region body
PF: predicated region fallthrough
CT: control target
= control target key end

     0   :  { %2 = vsyncpa [#allocation0], 0  ;;  %s61_s0 = inlined_call_operand.hbm [shape: c64[4,4,4,4], index: 0, kind: input, shape index: {}]   ;;  %s62_s1 = inlined_call_operand.vmem [shape: f32[4,4,4,4], index: 1, kind: output, shape index: {}]  }
   0x1   :  { %s3_s8 = sshll.u32 %s62_s1, 4  ;;  %s9_s11 = scalar_lea.hbm %s61_s0, 1024  ;;  %s4_s8 = int_to_ptr.vmem [resolvable:$true] %s3_s8 }
   0x2   :  { %p10_p0 = scmp.ne.s32.totalorder %s61_s0, %s9_s11  ;;  %s11_s16 = scalar_lea.hbm %s61_s0, 2048 }
   0x3   :  { %p12_p1 = scmp.lt.u32.totalorder %s11_s16, %s9_s11  ;;  %p13_p2 = scmp.lt.u32.totalorder %s9_s11, %s61_s0 }
   0x5   :  { %p14_p3 = por %p13_p2, %p12_p1 }
   0x7   :  { %p15_p4 = pnand %p14_p3, %p10_p0 }
   0x9   :  { %18 = shalt.err (!%p15_p4)  }
   0xa   :  { %s19_s1 = scalar_lea.vmem %s4_s8, 1024  ;;  %p24_p6 = scmp.lt.s32.totalorder %s4_s8, %s4_s8 }
   0xb   :  { %p20_p5 = scmp.ne.s32.totalorder %s4_s8, %s19_s1  ;;  %p25_p7 = scmp.lt.s32.totalorder %s19_s1, %s19_s1 }
   0xd   :  { %p26_p8 = por %p25_p7, %p24_p6 }
   0xf   :  { %p27_p9 = pnand %p26_p8, %p20_p5 }
  0x11   :  { %30 = shalt.err (!%p27_p9)  }
  0x12   :  { %6 = dma.hbm_to_vmem [thread:$0]  %s61_s0, 1024, %s4_s8, [#allocation0] }
  0x13   :  { %31 = dma.done.wait [#allocation0], 1024  }
  0x14   :  { %32 = vsyncadd [#allocation0], 4294966272 }
  0x15   :  { %8 = vsyncpa [#allocation0], 1 }

// kernel: custom-call.1
= control target key start
LH: loop header
LB: loop body
LE: loop exit
PB: predicated region body
PF: predicated region fallthrough
CT: control target
= control target key end

     0   :  { %s59_s0 = inlined_call_operand.hbm [shape: c64[4,4,4,4], index: 0, kind: input, shape index: {}]   ;;  %s60_s1 = inlined_call_operand.vmem [shape: f32[4,4,4,4], index: 1, kind: output, shape index: {}]  }
   0x1   :  { %s2_s8 = scalar_lea.hbm %s59_s0, 1024 }
   0x2   :  { %3 = vsyncpa [#allocation0], 0  ;;  %s4_s11 = sshll.u32 %s60_s1, 4  ;;  %s34_s14 = scalar_lea.hbm %s59_s0, 2048  ;;  %s5_s11 = int_to_ptr.vmem [resolvable:$true] %s4_s11 }
   0x3   :  { %p11_p0 = scmp.ne.s32.totalorder %s2_s8, %s34_s14  ;;  %p13_p1 = scmp.lt.u32.totalorder %s2_s8, %s59_s0 }
   0x4   :  { %p14_p2 = scmp.lt.u32.totalorder %s34_s14, %s34_s14  ;;  %p16_p4 = scmp.lt.u32.totalorder %s34_s14, %s2_s8 }
   0x6   :  { %p15_p3 = por %p14_p2, %p13_p1 }
   0x8   :  { %p17_p5 = por %p16_p4, %p15_p3 }
   0xa   :  { %p18_p6 = pnand %p17_p5, %p11_p0 }
   0xc   :  { %21 = shalt.err (!%p18_p6)  }
   0xd   :  { %s22_s17 = scalar_lea.vmem %s5_s11, 1024  ;;  %p27_p8 = scmp.lt.s32.totalorder %s5_s11, %s5_s11 }
   0xe   :  { %p23_p7 = scmp.ne.s32.totalorder %s5_s11, %s22_s17  ;;  %p28_p9 = scmp.lt.s32.totalorder %s22_s17, %s22_s17 }
  0x10   :  { %p29_p10 = por %p28_p9, %p27_p8 }
  0x12   :  { %p30_p11 = pnand %p29_p10, %p23_p7 }
  0x14   :  { %33 = shalt.err (!%p30_p11)  }
  0x15   :  { %7 = dma.hbm_to_vmem [thread:$0]  %s2_s8, 1024, %s5_s11, [#allocation0] }
  0x16   :  { %35 = dma.done.wait [#allocation0], 1024  }
  0x17   :  { %36 = vsyncadd [#allocation0], 4294966272 }
  0x18   :  { %9 = vsyncpa [#allocation0], 1 }

// kernel: reverse.0
= control target key start
LH: loop header
LB: loop body
LE: loop exit
PB: predicated region body
PF: predicated region fallthrough
CT: control target
= control target key end

     0   :  { %v71_v3 = vlaneseq  ;;  %v64_v9 = vld [vmem:[#allocation0 + $0x7] ss:$-1 sm:$0xff]  ;;  %v78_v12 = vld [vmem:[#allocation0 + $0x17] ss:$-1 sm:$0xff]  ;;  %s329_s0 = inlined_call_operand.vmem [shape: f32[2,4,16,7], index: 0, kind: input, shape index: {}]   ;;  %s330_s1 = inlined_call_operand.vmem [shape: f32[2,4,16,7], index: 1, kind: output, shape index: {}]  }
   0x1   :  { %v44_v0 = vld [vmem:[%s329_s0] sm:$0xff]  ;;  %v46_v1 = vld [vmem:[%s329_s0 + $0x8] sm:$0xff]  ;;  %v48_v2 = vld [vmem:[%s329_s0 + $0x10] sm:$0xff]  ;;  %v65_v10 = vrot.slane %v64_v9, 1  ;;  %v79_v14 = vrot.slane %v78_v12, 1 }
   0x2   :  { %45 = vst [vmem:[#allocation0 + $0x8] sm:$0xff] %v44_v0  ;;  %47 = vst [vmem:[#allocation0 + $0x18] sm:$0xff] %v46_v1  ;;  %v50_v4 = vld [vmem:[%s329_s0 + $0x18] sm:$0xff]  ;;  %v52_v5 = vld [vmem:[%s329_s0 + $0x20] sm:$0xff]  ;;  %v72_v11 = vshrl.u32 %v71_v3, 7 }
   0x3   :  { %49 = vst [vmem:[#allocation0 + $0x28] sm:$0xff] %v48_v2  ;;  %v54_v6 = vld [vmem:[%s329_s0 + $0x28] sm:$0xff]  ;;  %51 = vst [vmem:[#allocation0 + $0x38] sm:$0xff] %v50_v4  ;;  %v56_v7 = vld [vmem:[%s329_s0 + $0x30] sm:$0xff] }
   0x4   :  { %53 = vst [vmem:[#allocation0 + $0x48] sm:$0xff] %v52_v5  ;;  %55 = vst [vmem:[#allocation0 + $0x58] sm:$0xff] %v54_v6  ;;  %v58_v8 = vld [vmem:[%s329_s0 + $0x38] sm:$0xff]  ;;  %v92_v13 = vld [vmem:[#allocation0 + $0x27] ss:$-1 sm:$0xff]  ;;  %vm73_vm0 = vcmp.lt.s32.totalorder %v72_v11, 7 }
   0x5   :  { %57 = vst [vmem:[#allocation0 + $0x68] sm:$0xff] %v56_v7  ;;  %59 = vst [vmem:[#allocation0 + $0x78] sm:$0xff] %v58_v8  ;;  %v93_v15 = vrot.slane %v92_v13, 1  ;;  %v106_v16 = vld [vmem:[#allocation0 + $0x37] ss:$-1 sm:$0xff] }
   0x6   :  { %66 = vst [vmem:[#allocation1] sm:$0xff] %v65_v10  ;;  %v107_v17 = vrot.slane %v106_v16, 1  ;;  %v120_v18 = vld [vmem:[#allocation0 + $0x47] ss:$-1 sm:$0xff]  ;;  %v134_v19 = vld [vmem:[#allocation0 + $0x57] ss:$-1 sm:$0xff] }
   0x7   :  { %80 = vst [vmem:[#allocation1 + $0x8] sm:$0xff] %v79_v14  ;;  %94 = vst [vmem:[#allocation1 + $0x10] sm:$0xff] %v93_v15  ;;  %v121_v20 = vrot.slane %v120_v18, 1  ;;  %v135_v21 = vrot.slane %v134_v19, 1  ;;  %v148_v22 = vld [vmem:[#allocation0 + $0x67] ss:$-1 sm:$0xff] }
   0x8   :  { %v162_v23 = vld [vmem:[#allocation0 + $0x77] ss:$-1 sm:$0xff]  ;;  %108 = vst [vmem:[#allocation1 + $0x18] sm:$0xff] %v107_v17  ;;  %v149_v24 = vrot.slane %v148_v22, 1 }
   0x9   :  { %v163_v25 = vrot.slane %v162_v23, 1  ;;  %v69_v26 = vld [vmem:[#allocation0 + $0xf] ss:$-1 sm:$0xff]  ;;  %v83_v27 = vld [vmem:[#allocation0 + $0x1f] ss:$-1 sm:$0xff]  ;;  %122 = vst [vmem:[#allocation1 + $0x20] sm:$0xff] %v121_v20 }
   0xa   :  { %v97_v28 = vld [vmem:[#allocation0 + $0x2f] ss:$-1 sm:$0xff]  ;;  %136 = vst [vmem:[#allocation1 + $0x28] sm:$0xff] %v135_v21  ;;  %v70_v29 = vrot.slane %v69_v26, 1  ;;  %v84_v30 = vrot.slane %v83_v27, 1  ;;  %150 = vst [vmem:[#allocation1 + $0x30] sm:$0xff] %v149_v24 }
   0xb   :  { %v98_v31 = vrot.slane %v97_v28, 1  ;;  %v111_v32 = vld [vmem:[#allocation0 + $0x3f] ss:$-1 sm:$0xff]  ;;  %164 = vst [vmem:[#allocation1 + $0x38] sm:$0xff] %v163_v25  ;;  %v125_v34 = vld [vmem:[#allocation0 + $0x4f] ss:$-1 sm:$0xff] }
   0xc   :  { %v112_v33 = vrot.slane %v111_v32, 1  ;;  %v139_v35 = vld [vmem:[#allocation0 + $0x5f] ss:$-1 sm:$0xff]  ;;  %74 = vst.msk [vmem:[#allocation1] sm:$0xff] %vm73_vm0, %v70_v29  ;;  %88 = vst.msk [vmem:[#allocation1 + $0x8] sm:$0xff] %vm73_vm0, %v84_v30  ;;  %v126_v36 = vrot.slane %v125_v34, 1 }
   0xd   :  { %102 = vst.msk [vmem:[#allocation1 + $0x10] sm:$0xff] %vm73_vm0, %v98_v31  ;;  %v140_v37 = vrot.slane %v139_v35, 1  ;;  %v153_v38 = vld [vmem:[#allocation0 + $0x6f] ss:$-1 sm:$0xff]  ;;  %v167_v39 = vld [vmem:[#allocation0 + $0x7f] ss:$-1 sm:$0xff] }
   0xe   :  { %116 = vst.msk [vmem:[#allocation1 + $0x18] sm:$0xff] %vm73_vm0, %v112_v33  ;;  %v154_v40 = vrot.slane %v153_v38, 1  ;;  %v168_v41 = vrot.slane %v167_v39, 1  ;;  %130 = vst.msk [vmem:[#allocation1 + $0x20] sm:$0xff] %vm73_vm0, %v126_v36 }
   0xf   :  { %144 = vst.msk [vmem:[#allocation1 + $0x28] sm:$0xff] %vm73_vm0, %v140_v37 }
  0x10   :  { %158 = vst.msk [vmem:[#allocation1 + $0x30] sm:$0xff] %vm73_vm0, %v154_v40  ;;  %172 = vst.msk [vmem:[#allocation1 + $0x38] sm:$0xff] %vm73_vm0, %v168_v41 }
  0x13   :  { %v214_v42 = vld [vmem:[#allocation1] sm:$0xff]  ;;  %v216_v43 = vld [vmem:[#allocation1 + $0x8] sm:$0xff] }
  0x14   :  { %v218_v44 = vld [vmem:[#allocation1 + $0x10] sm:$0xff]  ;;  %215 = vst [vmem:[%s330_s1] sm:$0xff] %v214_v42  ;;  %217 = vst [vmem:[%s330_s1 + $0x8] sm:$0xff] %v216_v43 }
  0x15   :  { %219 = vst [vmem:[%s330_s1 + $0x10] sm:$0xff] %v218_v44  ;;  %v220_v45 = vld [vmem:[#allocation1 + $0x18] sm:$0xff]  ;;  %v222_v46 = vld [vmem:[#allocation1 + $0x20] sm:$0xff] }
  0x16   :  { %221 = vst [vmem:[%s330_s1 + $0x18] sm:$0xff] %v220_v45  ;;  %v224_v47 = vld [vmem:[#allocation1 + $0x28] sm:$0xff]  ;;  %223 = vst [vmem:[%s330_s1 + $0x20] sm:$0xff] %v222_v46 }
  0x17   :  { %225 = vst [vmem:[%s330_s1 + $0x28] sm:$0xff] %v224_v47  ;;  %v226_v48 = vld [vmem:[#allocation1 + $0x30] sm:$0xff]  ;;  %v228_v49 = vld [vmem:[#allocation1 + $0x38] sm:$0xff] }
  0x18   :  { %227 = vst [vmem:[%s330_s1 + $0x30] sm:$0xff] %v226_v48  ;;  %229 = vst [vmem:[%s330_s1 + $0x38] sm:$0xff] %v228_v49 }

// kernel: spectral_conv2d_fast.1
= control target key start
LH: loop header
LB: loop body
LE: loop exit
PB: predicated region body
PF: predicated region fallthrough
CT: control target
= control target key end

     0   :  { %v53_v0 = vlaneseq  ;;  %s1834_s0 = inlined_call_operand.vmem [shape: f32[2,2,4,512], index: 0, kind: input, shape index: {}]   ;;  %s1835_s1 = inlined_call_operand.vmem [shape: f32[2,4,4,512], index: 1, kind: input, shape index: {}]   ;;  %s1836_s2 = inlined_call_operand.vmem [shape: f32[2,2,4,512], index: 2, kind: output, shape index: {}]  }
   0x1   :  { %v1037_v1 = vld [vmem:[%s1834_s0] sm:$0xff]  ;;  %v1047_v3 = vld [vmem:[%s1835_s1 + $0x10] sm:$0xff] }
   0x2   :  { %v1042_v2 = vld [vmem:[%s1835_s1] sm:$0xff]  ;;  %v1057_v5 = vld [vmem:[%s1835_s1 + $0x30] sm:$0xff]  ;;  %v54_v6 = vshrl.u32 %v53_v0, 7  ;;  %v1080_v11 = vcombine.high %v1047_v3, %v1047_v3  ;;  %v1205_v0 = vld [vmem:[%s1834_s0 + $0x8] sm:$0xff] }
   0x3   :  { %v1052_v4 = vld [vmem:[%s1835_s1 + $0x20] sm:$0xff]  ;;  %v1072_v9 = vld [vmem:[%s1835_s1 + $0x50] sm:$0xff]  ;;  %v1076_v10 = vcombine.high %v1042_v2, %v1042_v2  ;;  %v1088_v13 = vcombine.high %v1057_v5, %v1057_v5 }
   0x4   :  { %v1062_v7 = vld [vmem:[%s1834_s0 + $0x20] sm:$0xff]  ;;  %v1084_v12 = vcombine.high %v1052_v4, %v1052_v4  ;;  %v1090_v14 = vsub.s32 0, %v54_v6  ;;  %v1092_v15 = vsub.s32 4, %v54_v6  ;;  %v1098_v17 = vsub.s32 1, %v54_v6  ;;  %v1182_v55 = vld [vmem:[%s1835_s1 + $0x70] sm:$0xff] }
   0x5   :  { %v1067_v8 = vld [vmem:[%s1835_s1 + $0x40] sm:$0xff]  ;;  %v1100_v18 = vsub.s32 5, %v54_v6  ;;  %v1104_v19 = vcombine.high %v1072_v9, %v1072_v9  ;;  %v1106_v20 = vsub.s32 2, %v54_v6  ;;  %v1108_v21 = vsub.s32 6, %v54_v6 }
   0x6   :  { %v1096_v16 = vcombine.high %v1067_v8, %v1067_v8  ;;  %v56_v22 = vrot.slane %v1037_v1, %v1090_v14  ;;  %v60_v23 = vrot.slane %v1037_v1, %v1092_v15  ;;  %v146_v24 = vrot.slane %v1062_v7, %v1090_v14  ;;  %v1161_v42 = vld [vmem:[%s1835_s1 + $0x60] sm:$0xff] }
   0x7   :  { %v150_v25 = vrot.slane %v1062_v7, %v1092_v15  ;;  %v264_v26 = vrot.slane %v1037_v1, %v1098_v17  ;;  %v268_v27 = vrot.slane %v1037_v1, %v1100_v18  ;;  %v350_v28 = vrot.slane %v1062_v7, %v1098_v17 }
   0x8   :  { %v354_v29 = vrot.slane %v1062_v7, %v1100_v18  ;;  %v1127_v30 = vrot.slane %v56_v22, %v1090_v14  ;;  %v1130_v31 = vrot.slane %v60_v23, %v1090_v14  ;;  %v1133_v32 = vrot.slane %v146_v24, %v1090_v14 }
   0x9   :  { %v1136_v33 = vrot.slane %v150_v25, %v1090_v14  ;;  %v1139_v34 = vrot.slane %v264_v26, %v1098_v17  ;;  %v1142_v35 = vrot.slane %v268_v27, %v1098_v17  ;;  %v1145_v36 = vrot.slane %v350_v28, %v1098_v17 }
   0xa   :  { %v1148_v37 = vrot.slane %v354_v29, %v1098_v17  ;;  %v131_v38 = vmul.f32 %v1127_v30, %v1042_v2  ;;  %v132_v39 = vmul.f32 %v1076_v10, %v1130_v31  ;;  %v221_v40 = vmul.f32 %v1067_v8, %v1133_v32 }
   0xb   :  { %1898 = vst [vmem:[#allocation2_spill] sm:$0xff] %v1136_v33  ;;  %1899 = vst [vmem:[#allocation3_spill] sm:$0xff] %v1139_v34  ;;  %v222_v41 = vmul.f32 %v1096_v16, %v1136_v33  ;;  %v339_v43 = vmul.f32 %v1139_v34, %v1047_v3  ;;  %v340_v44 = vmul.f32 %v1080_v11, %v1142_v35  ;;  %v1194_v59 = vsub.s32 3, %v54_v6 }
   0xc   :  { %1900 = vst [vmem:[#allocation4_spill] sm:$0xff] %v1142_v35  ;;  %1901 = vst [vmem:[#allocation5_spill] sm:$0xff] %v1145_v36  ;;  %v425_v45 = vmul.f32 %v1072_v9, %v1145_v36  ;;  %v426_v46 = vmul.f32 %v1104_v19, %v1148_v37  ;;  %v229_v47 = vsub.f32 %v131_v38, %v221_v40  ;;  %v1213_v25 = vsub.s32 7, %v54_v6 }
   0xd   :  { %1902 = vst [vmem:[#allocation6_spill] sm:$0xff] %v1148_v37  ;;  %v230_v48 = vsub.f32 %v132_v39, %v222_v41  ;;  %v484_v49 = vrot.slane %v1037_v1, %v1106_v20  ;;  %v488_v50 = vrot.slane %v1037_v1, %v1108_v21  ;;  %v570_v53 = vrot.slane %v1062_v7, %v1106_v20 }
   0xe   :  { %v433_v51 = vsub.f32 %v339_v43, %v425_v45  ;;  %v434_v52 = vsub.f32 %v340_v44, %v426_v46  ;;  %v574_v54 = vrot.slane %v1062_v7, %v1108_v21  ;;  %v1192_v58 = vcombine.high %v1161_v42, %v1161_v42  ;;  %v1240_v45 = vld [vmem:[%s1835_s1 + $0x8] sm:$0xff] }
   0xf   :  { %v1185_v56 = vrot.slane %v484_v49, %v1106_v20  ;;  %v1188_v57 = vrot.slane %v488_v50, %v1106_v20  ;;  %v1197_v62 = vrot.slane %v570_v53, %v1106_v20  ;;  %v704_v24 = vrot.slane %v1037_v1, %v1194_v59  ;;  %v1260_v49 = vld [vmem:[%s1835_s1 + $0x48] sm:$0xff] }
  0x10   :  { %v465_v60 = vadd.f32 %v433_v51, %v229_v47  ;;  %v466_v61 = vadd.f32 %v434_v52, %v230_v48  ;;  %v1200_v63 = vrot.slane %v574_v54, %v1106_v20  ;;  %v790_v28 = vrot.slane %v1062_v7, %v1194_v59  ;;  %v1255_v48 = vld [vmem:[%s1834_s0 + $0x28] sm:$0xff] }
  0x11   :  { %1903 = vst [vmem:[#allocation7_spill] sm:$0xff] %v1185_v56  ;;  %1904 = vst [vmem:[#allocation8_spill] sm:$0xff] %v1188_v57  ;;  %v559_v22 = vmul.f32 %v1185_v56, %v1052_v4  ;;  %v560_v23 = vmul.f32 %v1084_v12, %v1188_v57  ;;  %v645_v26 = vmul.f32 %v1161_v42, %v1197_v62 }
  0x12   :  { %1905 = vst [vmem:[#allocation9_spill] sm:$0xff] %v1197_v62  ;;  %1906 = vst [vmem:[#allocation10_spill] sm:$0xff] %v1200_v63  ;;  %v646_v27 = vmul.f32 %v1192_v58, %v1200_v63  ;;  %v1223_v29 = vcombine.high %v1182_v55, %v1182_v55  ;;  %v708_v38 = vrot.slane %v1037_v1, %v1213_v25 }
  0x13   :  { %v1228_v39 = vrot.slane %v704_v24, %v1194_v59  ;;  %v794_v6 = vrot.slane %v1062_v7, %v1213_v25  ;;  %v64_v40 = vrot.slane %v1205_v0, %v1090_v14  ;;  %v653_v41 = vsub.f32 %v559_v22, %v645_v26  ;;  %v1277_v24 = vld [vmem:[%s1835_s1 + $0x18] sm:$0xff] }
  0x14   :  { %v654_v43 = vsub.f32 %v560_v23, %v646_v27  ;;  %v1235_v44 = vrot.slane %v790_v28, %v1194_v59  ;;  %v68_v1 = vrot.slane %v1205_v0, %v1092_v15  ;;  %v1245_v46 = vrot.slane %v708_v38, %v1194_v59 }
  0x15   :  { %1907 = vst [vmem:[#allocation11_spill] sm:$0xff] %v1228_v39  ;;  %v779_v7 = vmul.f32 %v1228_v39, %v1057_v5  ;;  %v1250_v47 = vrot.slane %v794_v6, %v1194_v59  ;;  %v1263_v50 = vrot.slane %v64_v40, %v1090_v14  ;;  %v685_v51 = vadd.f32 %v653_v41, %v465_v60  ;;  %v1296_v40 = vld [vmem:[%s1835_s1 + $0x58] sm:$0xff] }
  0x16   :  { %1908 = vst [vmem:[#allocation12_spill] sm:$0xff] %v1235_v44  ;;  %1909 = vst [vmem:[#allocation13_spill] sm:$0xff] %v1245_v46  ;;  %v686_v52 = vadd.f32 %v654_v43, %v466_v61  ;;  %v865_v53 = vmul.f32 %v1182_v55, %v1235_v44  ;;  %v1268_v54 = vrot.slane %v68_v1, %v1090_v14 }
  0x17   :  { %1910 = vst [vmem:[#allocation14_spill] sm:$0xff] %v1250_v47  ;;  %1911 = vst [vmem:[#allocation15_spill] sm:$0xff] %v1263_v50  ;;  %v780_v22 = vmul.f32 %v1088_v13, %v1245_v46  ;;  %v866_v23 = vmul.f32 %v1223_v29, %v1250_v47  ;;  %v1281_v60 = vcombine.high %v1240_v45, %v1240_v45 }
  0x18   :  { %1912 = vst [vmem:[#allocation16_spill] sm:$0xff] %v1268_v54  ;;  %v133_v61 = vmul.f32 %v1263_v50, %v1240_v45  ;;  %v873_v26 = vsub.f32 %v779_v7, %v865_v53  ;;  %v154_v27 = vrot.slane %v1255_v48, %v1090_v14  ;;  %v158_v28 = vrot.slane %v1255_v48, %v1092_v15 }
  0x19   :  { %v1291_v38 = vcombine.high %v1260_v49, %v1260_v49  ;;  %v874_v6 = vsub.f32 %v780_v22, %v866_v23  ;;  %v134_v41 = vmul.f32 %v1281_v60, %v1268_v54  ;;  %v272_v43 = vrot.slane %v1205_v0, %v1098_v17 }
  0x1a   :  { %v276_v1 = vrot.slane %v1205_v0, %v1100_v18  ;;  %v905_v7 = vadd.f32 %v873_v26, %v685_v51  ;;  %v1305_v53 = vrot.slane %v154_v27, %v1090_v14  ;;  %v1308_v22 = vrot.slane %v158_v28, %v1090_v14  ;;  %v1325_v26 = vld [vmem:[%s1835_s1 + $0x28] sm:$0xff] }
  0x1b   :  { %v1312_v23 = vcombine.high %v1277_v24, %v1277_v24  ;;  %v906_v50 = vadd.f32 %v874_v6, %v686_v52  ;;  %v1315_v54 = vrot.slane %v272_v43, %v1098_v17  ;;  %v358_v51 = vrot.slane %v1255_v48, %v1098_v17 }
  0x1c   :  { %1913 = vst [vmem:[#allocation17_spill] sm:$0xff] %v1305_v53  ;;  %1914 = vst [vmem:[#allocation18_spill] sm:$0xff] %v1308_v22  ;;  %v1318_v47 = vrot.slane %v276_v1, %v1098_v17  ;;  %v223_v27 = vmul.f32 %v1260_v49, %v1305_v53  ;;  %v224_v52 = vmul.f32 %v1291_v38, %v1308_v22  ;;  %v1347_v22 = vld [vmem:[%s1835_s1 + $0x68] sm:$0xff] }
  0x1d   :  { %1915 = vst [vmem:[#allocation19_spill] sm:$0xff] %v1315_v54  ;;  %v362_v28 = vrot.slane %v1255_v48, %v1100_v18  ;;  %v1335_v6 = vcombine.high %v1296_v40, %v1296_v40  ;;  %v933_v43 = vcombine.low %v905_v7, %v906_v50  ;;  %v341_v1 = vmul.f32 %v1315_v54, %v1277_v24 }
  0x1e   :  { %1916 = vst [vmem:[#allocation20_spill] sm:$0xff] %v1318_v47  ;;  %v342_v44 = vmul.f32 %v1312_v23, %v1318_v47  ;;  %v1342_v46 = vrot.slane %v358_v51, %v1098_v17  ;;  %v231_v53 = vsub.f32 %v133_v61, %v223_v27  ;;  %v232_v39 = vsub.f32 %v134_v41, %v224_v52 }
  0x1f   :  { %v1350_v63 = vrot.slane %v362_v28, %v1098_v17  ;;  %v492_v50 = vrot.slane %v1205_v0, %v1106_v20  ;;  %v496_v51 = vrot.slane %v1205_v0, %v1108_v21  ;;  %v1360_v47 = vcombine.high %v1325_v26, %v1325_v26  ;;  %945 = vst [vmem:[%s1836_s2] sm:$0xff] %v933_v43  ;;  %v1377_v28 = vld [vmem:[%s1835_s1 + $0x38] sm:$0xff] }
  0x20   :  { %1917 = vst [vmem:[#allocation21_spill] sm:$0xff] %v1342_v46  ;;  %v427_v7 = vmul.f32 %v1296_v40, %v1342_v46  ;;  %v578_v27 = vrot.slane %v1255_v48, %v1106_v20  ;;  %v582_v52 = vrot.slane %v1255_v48, %v1108_v21  ;;  %v712_v54 = vrot.slane %v1205_v0, %v1194_v59 }
  0x21   :  { %1918 = vst [vmem:[#allocation22_spill] sm:$0xff] %v1350_v63  ;;  %v428_v61 = vmul.f32 %v1335_v6, %v1350_v63  ;;  %v1365_v41 = vrot.slane %v492_v50, %v1106_v20  ;;  %v1380_v63 = vrot.slane %v496_v51, %v1106_v20  ;;  %v1384_v50 = vcombine.high %v1347_v22, %v1347_v22 }
  0x22   :  { %v435_v46 = vsub.f32 %v341_v1, %v427_v7  ;;  %v1391_v57 = vrot.slane %v578_v27, %v1106_v20  ;;  %v1394_v56 = vrot.slane %v582_v52, %v1106_v20  ;;  %v1399_v1 = vld [vmem:[%s1835_s1 + $0x78] sm:$0xff]  ;;  %v1411_v27 = vld [vmem:[%s1834_s0 + $0x10] sm:$0xff] }
  0x23   :  { %1919 = vst [vmem:[#allocation23_spill] sm:$0xff] %v1365_v41  ;;  %1920 = vst [vmem:[#allocation24_spill] sm:$0xff] %v1380_v63  ;;  %v436_v62 = vsub.f32 %v342_v44, %v428_v61  ;;  %v561_v43 = vmul.f32 %v1365_v41, %v1325_v26  ;;  %v562_v51 = vmul.f32 %v1360_v47, %v1380_v63 }
  0x24   :  { %1921 = vst [vmem:[#allocation25_spill] sm:$0xff] %v1391_v57  ;;  %1922 = vst [vmem:[#allocation26_spill] sm:$0xff] %v1394_v56  ;;  %v467_v7 = vadd.f32 %v435_v46, %v231_v53  ;;  %v716_v44 = vrot.slane %v1205_v0, %v1213_v25  ;;  %v1406_v61 = vrot.slane %v712_v54, %v1194_v59 }
  0x25   :  { %1923 = vst [vmem:[#allocation27_spill] sm:$0xff] %v1399_v1  ;;  %v468_v52 = vadd.f32 %v436_v62, %v232_v39  ;;  %v647_v41 = vmul.f32 %v1347_v22, %v1391_v57  ;;  %v648_v46 = vmul.f32 %v1384_v50, %v1394_v56  ;;  %v1419_v53 = vcombine.high %v1377_v28, %v1377_v28  ;;  %v1433_v39 = vld [vmem:[%s1834_s0 + $0x30] sm:$0xff] }
  0x26   :  { %1924 = vst [vmem:[#allocation28_spill] sm:$0xff] %v1406_v61  ;;  %v1422_v0 = vrot.slane %v716_v44, %v1194_v59  ;;  %v781_v54 = vmul.f32 %v1406_v61, %v1377_v28  ;;  %v798_v63 = vrot.slane %v1255_v48, %v1194_v59  ;;  %v802_v62 = vrot.slane %v1255_v48, %v1213_v25 }
  0x27   :  { %v655_v56 = vsub.f32 %v561_v43, %v647_v41  ;;  %v656_v57 = vsub.f32 %v562_v51, %v648_v46  ;;  %v1437_v44 = vcombine.high %v1399_v1, %v1399_v1  ;;  %v72_v61 = vrot.slane %v1411_v27, %v1090_v14 }
  0x28   :  { %1925 = vst [vmem:[#allocation29_spill] sm:$0xff] %v1422_v0  ;;  %v782_v37 = vmul.f32 %v1419_v53, %v1422_v0  ;;  %v1444_v36 = vrot.slane %v798_v63, %v1194_v59  ;;  %v1447_v48 = vrot.slane %v802_v62, %v1194_v59  ;;  %v76_v41 = vrot.slane %v1411_v27, %v1092_v15 }
  0x29   :  { %1926 = vst [vmem:[#allocation30_spill] sm:$0xff] %v1437_v44  ;;  %v687_v43 = vadd.f32 %v655_v56, %v467_v7  ;;  %v688_v51 = vadd.f32 %v656_v57, %v468_v52  ;;  %v1452_v46 = vrot.slane %v72_v61, %v1090_v14  ;;  %v162_v35 = vrot.slane %v1433_v39, %v1090_v14 }
  0x2a   :  { %1927 = vst [vmem:[#allocation31_spill] sm:$0xff] %v1444_v36  ;;  %1928 = vst [vmem:[#allocation32_spill] sm:$0xff] %v1447_v48  ;;  %v867_v0 = vmul.f32 %v1399_v1, %v1444_v36  ;;  %v868_v63 = vmul.f32 %v1437_v44, %v1447_v48  ;;  %v1461_v62 = vrot.slane %v76_v41, %v1090_v14 }
  0x2b   :  { %1929 = vst [vmem:[#allocation33_spill] sm:$0xff] %v1452_v46  ;;  %v166_v34 = vrot.slane %v1433_v39, %v1092_v15  ;;  %v135_v56 = vmul.f32 %v1452_v46, %v1042_v2  ;;  %v1468_v57 = vrot.slane %v162_v35, %v1090_v14  ;;  %v280_v7 = vrot.slane %v1411_v27, %v1098_v17 }
  0x2c   :  { %1930 = vst [vmem:[#allocation34_spill] sm:$0xff] %v1461_v62  ;;  %v284_v61 = vrot.slane %v1411_v27, %v1100_v18  ;;  %v875_v52 = vsub.f32 %v781_v54, %v867_v0  ;;  %v876_v48 = vsub.f32 %v782_v37, %v868_v63  ;;  %v136_v41 = vmul.f32 %v1076_v10, %v1461_v62 }
  0x2d   :  { %1931 = vst [vmem:[#allocation35_spill] sm:$0xff] %v1468_v57  ;;  %v1477_v36 = vrot.slane %v166_v34, %v1090_v14  ;;  %v225_v46 = vmul.f32 %v1067_v8, %v1468_v57  ;;  %v1482_v35 = vrot.slane %v280_v7, %v1098_v17  ;;  %v366_v1 = vrot.slane %v1433_v39, %v1098_v17 }
  0x2e   :  { %v1485_v44 = vrot.slane %v284_v61, %v1098_v17  ;;  %v907_v0 = vadd.f32 %v875_v52, %v687_v43  ;;  %v908_v37 = vadd.f32 %v876_v48, %v688_v51  ;;  %v370_v34 = vrot.slane %v1433_v39, %v1100_v18 }
  0x2f   :  { %v226_v54 = vmul.f32 %v1096_v16, %v1477_v36  ;;  %v233_v63 = vsub.f32 %v135_v56, %v225_v46  ;;  %v343_v57 = vmul.f32 %v1482_v35, %v1047_v3  ;;  %v1498_v61 = vrot.slane %v366_v1, %v1098_v17 }
  0x30   :  { %1932 = vst [vmem:[#allocation36_spill] sm:$0xff] %v1485_v44  ;;  %v344_v7 = vmul.f32 %v1080_v11, %v1485_v44  ;;  %v934_v62 = vcombine.low %v907_v0, %v908_v37  ;;  %v1501_v48 = vrot.slane %v370_v34, %v1098_v17  ;;  %v500_v43 = vrot.slane %v1411_v27, %v1106_v20 }
  0x31   :  { %1933 = vst [vmem:[#allocation37_spill] sm:$0xff] %v1498_v61  ;;  %v234_v33 = vsub.f32 %v136_v41, %v226_v54  ;;  %v429_v51 = vmul.f32 %v1072_v9, %v1498_v61  ;;  %v504_v46 = vrot.slane %v1411_v27, %v1108_v21  ;;  %v586_v56 = vrot.slane %v1433_v39, %v1106_v20 }
  0x32   :  { %1934 = vst [vmem:[#allocation38_spill] sm:$0xff] %v1501_v48  ;;  %v590_v1 = vrot.slane %v1433_v39, %v1108_v21  ;;  %v430_v52 = vmul.f32 %v1104_v19, %v1501_v48  ;;  %v1516_v41 = vrot.slane %v500_v43, %v1106_v20  ;;  %v720_v0 = vrot.slane %v1411_v27, %v1194_v59 }
  0x33   :  { %v437_v37 = vsub.f32 %v343_v57, %v429_v51  ;;  %v1521_v54 = vrot.slane %v504_v46, %v1106_v20  ;;  %v1524_v34 = vrot.slane %v586_v56, %v1106_v20  ;;  %946 = vst [vmem:[%s1836_s2 + $0x8] sm:$0xff] %v934_v62  ;;  %v724_v57 = vrot.slane %v1411_v27, %v1213_v25  ;;  %v1542_v46 = vld [vmem:[%s1834_s0 + $0x18] sm:$0xff] }
  0x34   :  { %1935 = vst [vmem:[#allocation39_spill] sm:$0xff] %v1516_v41  ;;  %v1527_v61 = vrot.slane %v590_v1, %v1106_v20  ;;  %v438_v48 = vsub.f32 %v344_v7, %v430_v52  ;;  %v563_v43 = vmul.f32 %v1516_v41, %v1052_v4  ;;  %v1537_v51 = vrot.slane %v720_v0, %v1194_v59  ;;  %v1553_v27 = vld [vmem:[%s1834_s0 + $0x38] sm:$0xff] }
  0x35   :  { %1936 = vst [vmem:[#allocation40_spill] sm:$0xff] %v1521_v54  ;;  %1937 = vst [vmem:[#allocation41_spill] sm:$0xff] %v1524_v34  ;;  %v469_v56 = vadd.f32 %v437_v37, %v233_v63  ;;  %v564_v1 = vmul.f32 %v1084_v12, %v1521_v54  ;;  %v649_v62 = vmul.f32 %v1161_v42, %v1524_v34 }
  0x36   :  { %1938 = vst [vmem:[#allocation42_spill] sm:$0xff] %v1527_v61  ;;  %1939 = vst [vmem:[#allocation43_spill] sm:$0xff] %v1537_v51  ;;  %v650_v7 = vmul.f32 %v1192_v58, %v1527_v61  ;;  %v470_v52 = vadd.f32 %v438_v48, %v234_v33  ;;  %v1556_v0 = vrot.slane %v724_v57, %v1194_v59 }
  0x37   :  { %v783_v63 = vmul.f32 %v1537_v51, %v1057_v5  ;;  %v806_v37 = vrot.slane %v1433_v39, %v1194_v59  ;;  %v657_v54 = vsub.f32 %v563_v43, %v649_v62  ;;  %v810_v61 = vrot.slane %v1433_v39, %v1213_v25 }
  0x38   :  { %1940 = vst [vmem:[#allocation44_spill] sm:$0xff] %v1556_v0  ;;  %v658_v34 = vsub.f32 %v564_v1, %v650_v7  ;;  %v80_v41 = vrot.slane %v1542_v46, %v1090_v14  ;;  %v784_v33 = vmul.f32 %v1088_v13, %v1556_v0  ;;  %v84_v57 = vrot.slane %v1542_v46, %v1092_v15 }
  0x39   :  { %v1569_v48 = vrot.slane %v806_v37, %v1194_v59  ;;  %v170_v51 = vrot.slane %v1553_v27, %v1090_v14  ;;  %v689_v43 = vadd.f32 %v657_v54, %v469_v56  ;;  %v1576_v62 = vrot.slane %v810_v61, %v1194_v59 }
  0x3a   :  { %v690_v1 = vadd.f32 %v658_v34, %v470_v52  ;;  %v1579_v39 = vrot.slane %v80_v41, %v1090_v14  ;;  %v1584_v37 = vrot.slane %v84_v57, %v1090_v14  ;;  %v174_v0 = vrot.slane %v1553_v27, %v1092_v15 }
  0x3b   :  { %1941 = vst [vmem:[#allocation45_spill] sm:$0xff] %v1569_v48  ;;  %1942 = vst [vmem:[#allocation46_spill] sm:$0xff] %v1576_v62  ;;  %v869_v7 = vmul.f32 %v1182_v55, %v1569_v48  ;;  %v1589_v44 = vrot.slane %v170_v51, %v1090_v14  ;;  %v870_v54 = vmul.f32 %v1223_v29, %v1576_v62 }
  0x3c   :  { %1943 = vst [vmem:[#allocation47_spill] sm:$0xff] %v1579_v39  ;;  %1944 = vst [vmem:[#allocation48_spill] sm:$0xff] %v1584_v37  ;;  %v137_v61 = vmul.f32 %v1579_v39, %v1240_v45  ;;  %v288_v41 = vrot.slane %v1542_v46, %v1098_v17  ;;  %v292_v34 = vrot.slane %v1542_v46, %v1100_v18 }
  0x3d   :  { %v877_v56 = vsub.f32 %v783_v63, %v869_v7  ;;  %v138_v52 = vmul.f32 %v1281_v60, %v1584_v37  ;;  %v1602_v15 = vrot.slane %v174_v0, %v1090_v14  ;;  %v227_v51 = vmul.f32 %v1260_v49, %v1589_v44 }
  0x3e   :  { %v878_v57 = vsub.f32 %v784_v33, %v870_v54  ;;  %v1607_v62 = vrot.slane %v288_v41, %v1098_v17  ;;  %v1610_v39 = vrot.slane %v292_v34, %v1098_v17  ;;  %v374_v48 = vrot.slane %v1553_v27, %v1098_v17 }
  0x3f   :  { %v909_v63 = vadd.f32 %v877_v56, %v689_v43  ;;  %v228_v7 = vmul.f32 %v1291_v38, %v1602_v15  ;;  %v235_v37 = vsub.f32 %v137_v61, %v227_v51  ;;  %v378_v14 = vrot.slane %v1553_v27, %v1100_v18 }
  0x40   :  { %1945 = vst [vmem:[#allocation49_spill] sm:$0xff] %v1607_v62  ;;  %1946 = vst [vmem:[#allocation50_spill] sm:$0xff] %v1610_v39  ;;  %v910_v0 = vadd.f32 %v878_v57, %v690_v1  ;;  %v345_v33 = vmul.f32 %v1607_v62, %v1277_v24  ;;  %v346_v54 = vmul.f32 %v1312_v23, %v1610_v39  ;;  %v1968_v62 = vld [vmem:[#allocation11_spill] sm:$0xff] }
  0x41   :  { %v1623_v41 = vrot.slane %v374_v48, %v1098_v17  ;;  %v236_v34 = vsub.f32 %v138_v52, %v228_v7  ;;  %v1626_v43 = vrot.slane %v378_v14, %v1098_v17  ;;  %v508_v61 = vrot.slane %v1542_v46, %v1106_v20 }
  0x42   :  { %v512_v18 = vrot.slane %v1542_v46, %v1108_v21  ;;  %v935_v1 = vcombine.low %v909_v63, %v910_v0  ;;  %v594_v51 = vrot.slane %v1553_v27, %v1106_v20  ;;  %v598_v48 = vrot.slane %v1553_v27, %v1108_v21 }
  0x43   :  { %1947 = vst [vmem:[#allocation51_spill] sm:$0xff] %v1623_v41  ;;  %1948 = vst [vmem:[#allocation52_spill] sm:$0xff] %v1626_v43  ;;  %v431_v56 = vmul.f32 %v1296_v40, %v1623_v41  ;;  %v432_v17 = vmul.f32 %v1335_v6, %v1626_v43  ;;  %v1641_v52 = vrot.slane %v508_v61, %v1106_v20 }
  0x44   :  { %v1644_v57 = vrot.slane %v512_v18, %v1106_v20  ;;  %v728_v63 = vrot.slane %v1542_v46, %v1194_v59  ;;  %v1649_v14 = vrot.slane %v594_v51, %v1106_v20  ;;  %v1652_v0 = vrot.slane %v598_v48, %v1106_v20  ;;  %947 = vst [vmem:[%s1836_s2 + $0x10] sm:$0xff] %v935_v1 }
  0x45   :  { %1949 = vst [vmem:[#allocation53_spill] sm:$0xff] %v1641_v52  ;;  %v439_v7 = vsub.f32 %v345_v33, %v431_v56  ;;  %v440_v21 = vsub.f32 %v346_v54, %v432_v17  ;;  %v565_v43 = vmul.f32 %v1641_v52, %v1325_v26  ;;  %v732_v18 = vrot.slane %v1542_v46, %v1213_v25 }
  0x46   :  { %1950 = vst [vmem:[#allocation54_spill] sm:$0xff] %v1644_v57  ;;  %1951 = vst [vmem:[#allocation55_spill] sm:$0xff] %v1649_v14  ;;  %v566_v61 = vmul.f32 %v1360_v47, %v1644_v57  ;;  %v651_v56 = vmul.f32 %v1347_v22, %v1649_v14  ;;  %v652_v20 = vmul.f32 %v1384_v50, %v1652_v0 }
  0x47   :  { %1952 = vst [vmem:[#allocation56_spill] sm:$0xff] %v1652_v0  ;;  %v471_v33 = vadd.f32 %v439_v7, %v235_v37  ;;  %v1668_v54 = vrot.slane %v728_v63, %v1194_v59  ;;  %v472_v51 = vadd.f32 %v440_v21, %v236_v34  ;;  %v1671_v48 = vrot.slane %v732_v18, %v1194_v59  ;;  %v1957_v18 = vld [vmem:[#allocation2_spill] sm:$0xff] }
  0x48   :  { %v814_v46 = vrot.slane %v1553_v27, %v1194_v59  ;;  %v818_v1 = vrot.slane %v1553_v27, %v1213_v25  ;;  %v659_v37 = vsub.f32 %v565_v43, %v651_v56  ;;  %v660_v17 = vsub.f32 %v566_v61, %v652_v20  ;;  %v1958_v56 = vld [vmem:[#allocation27_spill] sm:$0xff] }
  0x49   :  { %1953 = vst [vmem:[#allocation57_spill] sm:$0xff] %v1668_v54  ;;  %1954 = vst [vmem:[#allocation58_spill] sm:$0xff] %v1671_v48  ;;  %v785_v7 = vmul.f32 %v1668_v54, %v1377_v28  ;;  %v237_v0 = vmul.f32 %v1067_v8, %v1127_v30  ;;  %v786_v34 = vmul.f32 %v1419_v53, %v1671_v48  ;;  %v1960_v54 = vld [vmem:[#allocation3_spill] sm:$0xff] }
  0x4a   :  { %v1684_v63 = vrot.slane %v814_v46, %v1194_v59  ;;  %v1687_v21 = vrot.slane %v818_v1, %v1194_v59  ;;  %v238_v25 = vmul.f32 %v1096_v16, %v1130_v31  ;;  %v691_v27 = vadd.f32 %v659_v37, %v471_v33  ;;  %v1959_v46 = vld [vmem:[#allocation30_spill] sm:$0xff]  ;;  %v1961_v1 = vld [vmem:[#allocation4_spill] sm:$0xff]  ;;  %v1962_v37 = vld [vmem:[#allocation5_spill] sm:$0xff] }
  0x4b   :  { %v692_v43 = vadd.f32 %v660_v17, %v472_v51  ;;  %v245_v61 = vmul.f32 %v1133_v32, %v1042_v2  ;;  %v246_v30 = vmul.f32 %v1957_v18, %v1076_v10  ;;  %v441_v59 = vmul.f32 %v1072_v9, %v1960_v54  ;;  %v1963_v17 = vld [vmem:[#allocation6_spill] sm:$0xff] }
  0x4c   :  { %1955 = vst [vmem:[#allocation59_spill] sm:$0xff] %v1684_v63  ;;  %1956 = vst [vmem:[#allocation60_spill] sm:$0xff] %v1687_v21  ;;  %v871_v20 = vmul.f32 %v1958_v56, %v1684_v63  ;;  %v872_v48 = vmul.f32 %v1959_v46, %v1687_v21  ;;  %v442_v31 = vmul.f32 %v1104_v19, %v1961_v1  ;;  %v1964_v63 = vld [vmem:[#allocation7_spill] sm:$0xff]  ;;  %v1965_v21 = vld [vmem:[#allocation8_spill] sm:$0xff] }
  0x4d   :  { %v253_v33 = vadd.f32 %v245_v61, %v237_v0  ;;  %v254_v51 = vadd.f32 %v246_v30, %v238_v25  ;;  %v449_v32 = vmul.f32 %v1962_v37, %v1047_v3  ;;  %v450_v18 = vmul.f32 %v1963_v17, %v1080_v11  ;;  %v1966_v1 = vld [vmem:[#allocation9_spill] sm:$0xff]  ;;  %v1967_v25 = vld [vmem:[#allocation10_spill] sm:$0xff] }
  0x4e   :  { %v879_v14 = vsub.f32 %v785_v7, %v871_v20  ;;  %v880_v57 = vsub.f32 %v786_v34, %v872_v48  ;;  %v661_v52 = vmul.f32 %v1161_v42, %v1964_v63  ;;  %v662_v41 = vmul.f32 %v1192_v58, %v1965_v21  ;;  %v1969_v48 = vld [vmem:[#allocation13_spill] sm:$0xff] }
  0x4f   :  { %v457_v54 = vadd.f32 %v449_v32, %v441_v59  ;;  %v458_v39 = vadd.f32 %v450_v18, %v442_v31  ;;  %v669_v0 = vmul.f32 %v1966_v1, %v1052_v4  ;;  %v670_v61 = vmul.f32 %v1967_v25, %v1084_v12  ;;  %v1970_v31 = vld [vmem:[#allocation12_spill] sm:$0xff]  ;;  %v1971_v18 = vld [vmem:[#allocation14_spill] sm:$0xff]  ;;  %v1972_v25 = vld [vmem:[#allocation15_spill] sm:$0xff] }
  0x50   :  { %v911_v30 = vadd.f32 %v879_v14, %v691_v27  ;;  %v912_v37 = vadd.f32 %v880_v57, %v692_v43  ;;  %v881_v7 = vmul.f32 %v1182_v55, %v1968_v62  ;;  %v882_v34 = vmul.f32 %v1223_v29, %v1969_v48  ;;  %v1973_v62 = vld [vmem:[#allocation16_spill] sm:$0xff] }
  0x51   :  { %v473_v63 = vadd.f32 %v457_v54, %v253_v33  ;;  %v474_v20 = vadd.f32 %v458_v39, %v254_v51  ;;  %v677_v17 = vadd.f32 %v669_v0, %v661_v52  ;;  %v678_v21 = vadd.f32 %v670_v61, %v662_v41  ;;  %v1974_v33 = vld [vmem:[#allocation17_spill] sm:$0xff]  ;;  %v1975_v51 = vld [vmem:[#allocation18_spill] sm:$0xff]  ;;  %v1976_v61 = vld [vmem:[#allocation19_spill] sm:$0xff] }
  0x52   :  { %v936_v59 = vcombine.low %v911_v30, %v912_v37  ;;  %v889_v32 = vmul.f32 %v1970_v31, %v1057_v5  ;;  %v890_v1 = vmul.f32 %v1971_v18, %v1088_v13  ;;  %v239_v57 = vmul.f32 %v1260_v49, %v1972_v25  ;;  %v1977_v37 = vld [vmem:[#allocation20_spill] sm:$0xff]  ;;  %v1980_v18 = vld [vmem:[#allocation23_spill] sm:$0xff] }
  0x53   :  { %v693_v14 = vadd.f32 %v677_v17, %v473_v63  ;;  %v694_v27 = vadd.f32 %v678_v21, %v474_v20  ;;  %v240_v43 = vmul.f32 %v1291_v38, %v1973_v62  ;;  %v247_v39 = vmul.f32 %v1974_v33, %v1240_v45  ;;  %v1978_v63 = vld [vmem:[#allocation21_spill] sm:$0xff]  ;;  %v1979_v21 = vld [vmem:[#allocation22_spill] sm:$0xff]  ;;  %v1981_v25 = vld [vmem:[#allocation24_spill] sm:$0xff] }
  0x54   :  { %v897_v52 = vadd.f32 %v889_v32, %v881_v7  ;;  %v898_v41 = vadd.f32 %v890_v1, %v882_v34  ;;  %v248_v54 = vmul.f32 %v1975_v51, %v1281_v60  ;;  %v443_v30 = vmul.f32 %v1296_v40, %v1976_v61  ;;  %948 = vst [vmem:[%s1836_s2 + $0x18] sm:$0xff] %v936_v59  ;;  %v1982_v62 = vld [vmem:[#allocation25_spill] sm:$0xff]  ;;  %v1983_v59 = vld [vmem:[#allocation26_spill] sm:$0xff] }
  0x55   :  { %v255_v0 = vadd.f32 %v247_v39, %v239_v57  ;;  %v444_v48 = vmul.f32 %v1335_v6, %v1977_v37  ;;  %v451_v20 = vmul.f32 %v1978_v63, %v1277_v24  ;;  %v452_v31 = vmul.f32 %v1979_v21, %v1312_v23  ;;  %v1987_v21 = vld [vmem:[#allocation32_spill] sm:$0xff] }
  0x56   :  { %v913_v17 = vadd.f32 %v897_v52, %v693_v14  ;;  %v914_v7 = vadd.f32 %v898_v41, %v694_v27  ;;  %v256_v34 = vadd.f32 %v248_v54, %v240_v43  ;;  %v663_v1 = vmul.f32 %v1347_v22, %v1980_v18  ;;  %v1984_v27 = vld [vmem:[#allocation28_spill] sm:$0xff]  ;;  %v1985_v54 = vld [vmem:[#allocation29_spill] sm:$0xff] }
  0x57   :  { %v459_v32 = vadd.f32 %v451_v20, %v443_v30  ;;  %v664_v57 = vmul.f32 %v1384_v50, %v1981_v25  ;;  %v671_v33 = vmul.f32 %v1982_v62, %v1325_v26  ;;  %v460_v51 = vadd.f32 %v452_v31, %v444_v48  ;;  %v1986_v30 = vld [vmem:[#allocation31_spill] sm:$0xff]  ;;  %v1988_v31 = vld [vmem:[#allocation33_spill] sm:$0xff]  ;;  %v1989_v25 = vld [vmem:[#allocation34_spill] sm:$0xff] }
  0x58   :  { %v962_v39 = vcombine.low %v913_v17, %v914_v7  ;;  %v672_v14 = vmul.f32 %v1983_v59, %v1360_v47  ;;  %v883_v43 = vmul.f32 %v1958_v56, %v1984_v27  ;;  %v884_v61 = vmul.f32 %v1959_v46, %v1985_v54  ;;  %v1994_v54 = vld [vmem:[#allocation39_spill] sm:$0xff] }
  0x59   :  { %v475_v52 = vadd.f32 %v459_v32, %v255_v0  ;;  %v679_v41 = vadd.f32 %v671_v33, %v663_v1  ;;  %v891_v37 = vmul.f32 %v1986_v30, %v1377_v28  ;;  %v476_v63 = vadd.f32 %v460_v51, %v256_v34  ;;  %v1990_v34 = vld [vmem:[#allocation35_spill] sm:$0xff] }
  0x5a   :  { %v680_v20 = vadd.f32 %v672_v14, %v664_v57  ;;  %v892_v17 = vmul.f32 %v1987_v21, %v1419_v53  ;;  %v241_v18 = vmul.f32 %v1067_v8, %v1988_v31  ;;  %v242_v0 = vmul.f32 %v1096_v16, %v1989_v25  ;;  %998 = vst [vmem:[%s1836_s2 + $0x20] sm:$0xff] %v962_v39  ;;  %v1991_v8 = vld [vmem:[#allocation36_spill] sm:$0xff]  ;;  %v1992_v16 = vld [vmem:[#allocation37_spill] sm:$0xff] }
  0x5b   :  { %v695_v48 = vadd.f32 %v679_v41, %v475_v52  ;;  %v899_v7 = vadd.f32 %v891_v37, %v883_v43  ;;  %v249_v57 = vmul.f32 %v1990_v34, %v1042_v2  ;;  %v250_v62 = vmul.f32 %v1477_v36, %v1076_v10  ;;  %v1993_v52 = vld [vmem:[#allocation38_spill] sm:$0xff]  ;;  %v1995_v36 = vld [vmem:[#allocation40_spill] sm:$0xff] }
  0x5c   :  { %v696_v32 = vadd.f32 %v680_v20, %v476_v63  ;;  %v900_v1 = vadd.f32 %v892_v17, %v884_v61  ;;  %v445_v51 = vmul.f32 %v1072_v9, %v1482_v35  ;;  %v446_v59 = vmul.f32 %v1104_v19, %v1991_v8  ;;  %v1996_v9 = vld [vmem:[#allocation41_spill] sm:$0xff]  ;;  %v1998_v63 = vld [vmem:[#allocation43_spill] sm:$0xff]  ;;  %v1999_v17 = vld [vmem:[#allocation44_spill] sm:$0xff] }
  0x5d   :  { %v915_v33 = vadd.f32 %v899_v7, %v695_v48  ;;  %v453_v14 = vmul.f32 %v1992_v16, %v1047_v3  ;;  %v257_v39 = vadd.f32 %v249_v57, %v241_v18  ;;  %v258_v43 = vadd.f32 %v250_v62, %v242_v0  ;;  %v1997_v3 = vld [vmem:[#allocation42_spill] sm:$0xff]  ;;  %v2004_v62 = vld [vmem:[#allocation49_spill] sm:$0xff] }
  0x5e   :  { %v916_v27 = vadd.f32 %v900_v1, %v696_v32  ;;  %v454_v41 = vmul.f32 %v1993_v52, %v1080_v11  ;;  %v665_v10 = vmul.f32 %v1161_v42, %v1994_v54  ;;  %v666_v61 = vmul.f32 %v1192_v58, %v1995_v36  ;;  %v2000_v42 = vld [vmem:[#allocation45_spill] sm:$0xff]  ;;  %v2002_v32 = vld [vmem:[#allocation47_spill] sm:$0xff]  ;;  %v2003_v1 = vld [vmem:[#allocation48_spill] sm:$0xff] }
  0x5f   :  { %v461_v2 = vadd.f32 %v453_v14, %v445_v51  ;;  %v673_v35 = vmul.f32 %v1996_v9, %v1052_v4  ;;  %v674_v37 = vmul.f32 %v1997_v3, %v1084_v12  ;;  %v885_v20 = vmul.f32 %v1182_v55, %v1998_v63  ;;  %v2001_v4 = vld [vmem:[#allocation46_spill] sm:$0xff]  ;;  %v2012_v54 = vld [vmem:[#allocation57_spill] sm:$0xff] }
  0x60   :  { %v963_v19 = vcombine.low %v915_v33, %v916_v27  ;;  %v462_v30 = vadd.f32 %v454_v41, %v446_v59  ;;  %v886_v48 = vmul.f32 %v1223_v29, %v1999_v17  ;;  %v893_v7 = vmul.f32 %v2000_v42, %v1057_v5  ;;  %v2007_v27 = vld [vmem:[#allocation52_spill] sm:$0xff] }
  0x61   :  { %v477_v21 = vadd.f32 %v461_v2, %v257_v39  ;;  %v681_v11 = vadd.f32 %v673_v35, %v665_v10  ;;  %v682_v31 = vadd.f32 %v674_v37, %v666_v61  ;;  %v894_v18 = vmul.f32 %v2001_v4, %v1088_v13  ;;  %v2013_v61 = vld [vmem:[#allocation58_spill] sm:$0xff] }
  0x62   :  { %v478_v58 = vadd.f32 %v462_v30, %v258_v43  ;;  %v901_v0 = vadd.f32 %v893_v7, %v885_v20  ;;  %v243_v12 = vmul.f32 %v1260_v49, %v2002_v32  ;;  %v244_v55 = vmul.f32 %v1291_v38, %v2003_v1  ;;  %999 = vst [vmem:[%s1836_s2 + $0x28] sm:$0xff] %v963_v19  ;;  %v2005_v49 = vld [vmem:[#allocation50_spill] sm:$0xff]  ;;  %v2006_v38 = vld [vmem:[#allocation51_spill] sm:$0xff] }
  0x63   :  { %v697_v25 = vadd.f32 %v681_v11, %v477_v21  ;;  %v902_v34 = vadd.f32 %v894_v18, %v886_v48  ;;  %v251_v5 = vmul.f32 %v1589_v44, %v1240_v45  ;;  %v252_v13 = vmul.f32 %v1602_v15, %v1281_v60  ;;  %v2008_v44 = vld [vmem:[#allocation53_spill] sm:$0xff]  ;;  %v2009_v15 = vld [vmem:[#allocation54_spill] sm:$0xff] }
  0x64   :  { %v698_v29 = vadd.f32 %v682_v31, %v478_v58  ;;  %v447_v33 = vmul.f32 %v1296_v40, %v2004_v62  ;;  %v448_v51 = vmul.f32 %v1335_v6, %v2005_v49  ;;  %v455_v8 = vmul.f32 %v2006_v38, %v1277_v24  ;;  %v2010_v40 = vld [vmem:[#allocation55_spill] sm:$0xff]  ;;  %v2011_v24 = vld [vmem:[#allocation56_spill] sm:$0xff] }
  0x65   :  { %v917_v57 = vadd.f32 %v901_v0, %v697_v25  ;;  %v259_v16 = vadd.f32 %v251_v5, %v243_v12  ;;  %v260_v14 = vadd.f32 %v252_v13, %v244_v55  ;;  %v456_v39 = vmul.f32 %v2007_v27, %v1312_v23 }
  0x66   :  { %v918_v59 = vadd.f32 %v902_v34, %v698_v29  ;;  %v463_v45 = vadd.f32 %v455_v8, %v447_v33  ;;  %v667_v60 = vmul.f32 %v1347_v22, %v2008_v44  ;;  %v668_v43 = vmul.f32 %v1384_v50, %v2009_v15  ;;  %v2014_v22 = vld [vmem:[#allocation59_spill] sm:$0xff] }
  0x67   :  { %v675_v52 = vmul.f32 %v2010_v40, %v1325_v26  ;;  %v464_v41 = vadd.f32 %v456_v39, %v448_v51  ;;  %v676_v2 = vmul.f32 %v2011_v24, %v1360_v47  ;;  %v887_v10 = vmul.f32 %v1958_v56, %v2012_v54  ;;  %v2015_v26 = vld [vmem:[#allocation60_spill] sm:$0xff] }
  0x68   :  { %v964_v6 = vcombine.low %v917_v57, %v918_v59  ;;  %v479_v36 = vadd.f32 %v463_v45, %v259_v16  ;;  %v888_v9 = vmul.f32 %v1959_v46, %v2013_v61  ;;  %v895_v35 = vmul.f32 %v2014_v22, %v1377_v28 }
  0x69   :  { %v683_v23 = vadd.f32 %v675_v52, %v667_v60  ;;  %v480_v50 = vadd.f32 %v464_v41, %v260_v14  ;;  %v684_v19 = vadd.f32 %v676_v2, %v668_v43  ;;  %v896_v30 = vmul.f32 %v2015_v26, %v1419_v53 }
  0x6a   :  { %v903_v37 = vadd.f32 %v895_v35, %v887_v10  ;;  %1000 = vst [vmem:[%s1836_s2 + $0x30] sm:$0xff] %v964_v6 }
  0x6b   :  { %v699_v3 = vadd.f32 %v683_v23, %v479_v36  ;;  %v700_v47 = vadd.f32 %v684_v19, %v480_v50  ;;  %v904_v56 = vadd.f32 %v896_v30, %v888_v9 }
  0x6d   :  { %v919_v63 = vadd.f32 %v903_v37, %v699_v3  ;;  %v920_v20 = vadd.f32 %v904_v56, %v700_v47 }
  0x6f   :  { %v965_v21 = vcombine.low %v919_v63, %v920_v20 }
  0x71   :  { %1001 = vst [vmem:[%s1836_s2 + $0x38] sm:$0xff] %v965_v21 }

</bundles_post_ra>
